<compile_context>
chip_gen: v5e
topology: v5e:2x2
jax: 0.10.0
libtpu: 0.0.40
codegen_flags: <defaults>
</compile_context>

<pallas_src>
import math
import functools

import jax
import jax.numpy as jnp
from jax.experimental import pallas as pl
from jax.experimental.pallas import tpu as pltpu


# ---------------------------------------------------------------------------
# PE buffer construction — matches the torch __init__ exactly, including its
# div_term = exp(arange(1, d_model+1, 2) * (-ln(10000)/d_model)) quirk
# (intentionally NOT the canonical arange(0, d_model, 2) formula).
# ---------------------------------------------------------------------------
def make_positional_encoding(d_model: int, max_len: int = 50) -> jnp.ndarray:
    position = jnp.arange(0, max_len, dtype=jnp.float32)[:, None]            # (L, 1)
    div_term = jnp.exp(
        jnp.arange(1, d_model + 1, 2, dtype=jnp.float32)
        * (-math.log(10000.0) / d_model))                                    # (ceil(D/2),)
    pe = jnp.zeros((max_len, d_model), dtype=jnp.float32)
    pe = pe.at[:, 0::2].set(jnp.sin(position * div_term))
    if d_model % 2 == 1:
        pe = pe.at[:, 1::2].set(jnp.cos(position * div_term[:-1]))
    else:
        pe = pe.at[:, 1::2].set(jnp.cos(position * div_term))
    return pe[:, None, :]                                                    # (L, 1, D)


# ---------------------------------------------------------------------------
# Counter-based uniform bits (lowbias32 finalizer).  Deterministic in the
# global element index and the seed, so the dropout mask is independent of
# the tiling and identical on TPU hardware and under interpretation.
# TODO(synk): cannot bit-match torch's RNG stream; only the dropout statistics
# (keep prob 1-p, 1/(1-p) scaling) are reproduced.
# ---------------------------------------------------------------------------
def _uniform_bits(shape, s_off, seed_i32):
    _, bb, dd = shape
    s_idx = jax.lax.broadcasted_iota(jnp.int32, shape, 0) + s_off
    b_idx = jax.lax.broadcasted_iota(jnp.int32, shape, 1)
    d_idx = jax.lax.broadcasted_iota(jnp.int32, shape, 2)
    idx = (s_idx * bb + b_idx) * dd + d_idx              # global element id
    seed_mix = seed_i32 * jnp.int32(-1640531527)         # seed * golden ratio (mod 2^32)
    h = (idx ^ seed_mix).astype(jnp.uint32)
    h = (h ^ (h >> 16)) * jnp.uint32(0x7FEB352D)
    h = (h ^ (h >> 15)) * jnp.uint32(0x846CA68B)
    h = h ^ (h >> 16)
    return h


# ---------------------------------------------------------------------------
# Kernels.  Blocks: x (tile_s, B, D), pe (tile_s, 1, D), out (tile_s, B, D_out).
# ---------------------------------------------------------------------------
def _pe_add_kernel(x_ref, pe_ref, o_ref):
    # pe block is (tile_s, 1, D): batch broadcast happens in-register.
    o_ref[...] = x_ref[...] + pe_ref[...]


def _pe_append_kernel(x_ref, pe_ref, o_ref):
    xv = x_ref[...]
    pv = jnp.broadcast_to(pe_ref[...], xv.shape)
    o_ref[...] = jnp.concatenate([xv, pv], axis=-1)       # fused concat, one store


def _pe_add_dropout_kernel(seed_ref, x_ref, pe_ref, o_ref, *, tile_s, threshold, scale):
    y = x_ref[...] + pe_ref[...]
    s_off = pl.program_id(0) * tile_s
    bits = _uniform_bits(o_ref.shape, s_off, seed_ref[0])
    keep = bits >= jnp.uint32(threshold)                  # P(keep) = 1 - p
    scale_v = jnp.asarray(scale, dtype=y.dtype)
    o_ref[...] = jnp.where(keep, y * scale_v, jnp.zeros_like(y)).astype(o_ref.dtype)


def _pe_append_dropout_kernel(seed_ref, x_ref, pe_ref, o_ref, *, tile_s, threshold, scale):
    xv = x_ref[...]
    pv = jnp.broadcast_to(pe_ref[...], xv.shape)
    y = jnp.concatenate([xv, pv], axis=-1)                # fused: no HBM round-trip
    s_off = pl.program_id(0) * tile_s
    bits = _uniform_bits(o_ref.shape, s_off, seed_ref[0])
    keep = bits >= jnp.uint32(threshold)
    scale_v = jnp.asarray(scale, dtype=y.dtype)
    o_ref[...] = jnp.where(keep, y * scale_v, jnp.zeros_like(y)).astype(o_ref.dtype)


# ---------------------------------------------------------------------------
# Forward pass.
# ---------------------------------------------------------------------------
_TARGET_BLOCK_BYTES = 2 * 1024 * 1024   # ~2 MiB output blocks: amortizes per-step
                                        # overhead; double-buffered I/O stays < 16 MiB
                                        # (v5e default scoped VMEM), ample on v6e/v7x.


def positional_encoding_forward(x, pe, *, dropout_p=0.1, append=False,
                                training=False, seed=0, force_pallas=False,
                                tile_s=None):
    """x: (S, B, D); pe: (max_len, 1, D) from make_positional_encoding."""
    S, B, D = x.shape
    pe_s = pe[:S].astype(x.dtype)                  # (S, 1, D): never batch-broadcast in HBM
    d_out = 2 * D if append else D
    use_dropout = bool(training) and dropout_p > 0.0   # caller keeps p bounded away from 1

    # Tiny inputs: a pallas_call launch costs more than the fused XLA op.
    use_pallas = force_pallas or (S * B * d_out * x.dtype.itemsize >= (1 << 20))
    if not use_pallas:
        if append:
            y = jnp.concatenate([x, jnp.broadcast_to(pe_s, (S, B, D))], axis=2)
        else:
            y = x + pe_s
        if use_dropout:
            keep = jax.random.bernoulli(jax.random.PRNGKey(seed), 1.0 - dropout_p, y.shape)
            y = jnp.where(keep, y / (1.0 - dropout_p), 0.0).astype(x.dtype)
        return y

    # Sequence-axis tiling.  Last two block dims equal the full (B, D[_out]) dims,
    # so packed-tile rules hold for any dtype, tile_s needs no alignment, and
    # Pallas handles partial edge blocks (no wrapper-side pad/slice copies).
    if tile_s is None:
        row_out_bytes = max(B * d_out * x.dtype.itemsize, 1)
        tile_s = max(1, min(S, _TARGET_BLOCK_BYTES // row_out_bytes))
    tile_s = int(max(1, min(int(tile_s), S)))
    grid = (pl.cdiv(S, tile_s),)

    out_shape = jax.ShapeDtypeStruct((S, B, d_out), x.dtype)
    cparams = pltpu.CompilerParams(dimension_semantics=("parallel",))

    if use_dropout:
        threshold = min(int(round(dropout_p * 2.0 ** 32)), 2 ** 32 - 1)
        scale = 1.0 / (1.0 - dropout_p)
        base = _pe_append_dropout_kernel if append else _pe_add_dropout_kernel
        kernel = functools.partial(base, tile_s=tile_s, threshold=threshold, scale=scale)
        gs = pltpu.PrefetchScalarGridSpec(
            num_scalar_prefetch=1, grid=grid,
            in_specs=[pl.BlockSpec((tile_s, B, D), lambda i, seed_ref: (i, 0, 0)),
                      pl.BlockSpec((tile_s, 1, D), lambda i, seed_ref: (i, 0, 0))],
            out_specs=pl.BlockSpec((tile_s, B, d_out), lambda i, seed_ref: (i, 0, 0)))
        seed_arr = jnp.array([seed], dtype=jnp.int32)
        return pl.pallas_call(kernel, out_shape=out_shape, grid_spec=gs,
                              compiler_params=cparams)(seed_arr, x, pe_s)

    kernel = _pe_append_kernel if append else _pe_add_kernel
    return pl.pallas_call(
        kernel, out_shape=out_shape, grid=grid,
        in_specs=[pl.BlockSpec((tile_s, B, D), lambda i: (i, 0, 0)),
                  pl.BlockSpec((tile_s, 1, D), lambda i: (i, 0, 0))],
        out_specs=pl.BlockSpec((tile_s, B, d_out), lambda i: (i, 0, 0)),
        compiler_params=cparams)(x, pe_s)


if __name__ == "__main__":
    # Small shapes consistent with the module: seq=8, batch=2, d_model=32.
    S, B, D = 8, 2, 32
    max_len = 50

    key = jax.random.PRNGKey(0)
    x = jax.random.normal(key, (S, B, D), dtype=jnp.float32)
    pe = make_positional_encoding(D, max_len)

    # 1) Default path: append=False, eval mode (dropout is identity).
    out = positional_encoding_forward(x, pe, dropout_p=0.1, append=False,
                                      training=False, force_pallas=True)
    out = jax.block_until_ready(out)
    ref = x + pe[:S]
    assert out.shape == (S, B, D)
    assert jnp.allclose(out, ref, atol=1e-6), "add mismatch vs reference"

    # 2) Multi-block grid along the sequence axis (tile_s=8 -> grid (5,)).
    S2, B2, D2 = 40, 4, 128
    x2 = jax.random.normal(jax.random.PRNGKey(1), (S2, B2, D2), jnp.float32)
    pe2 = make_positional_encoding(D2, max_len)
    out2 = positional_encoding_forward(x2, pe2, append=False, training=False,
                                       force_pallas=True, tile_s=8)
    out2 = jax.block_until_ready(out2)
    assert jnp.allclose(out2, x2 + pe2[:S2], atol=1e-6), "tiled add mismatch"

    # 3) append=True, eval mode (concat fused into the kernel).
    out_app = positional_encoding_forward(x, pe, dropout_p=0.1, append=True,
                                          training=False, force_pallas=True)
    out_app = jax.block_until_ready(out_app)
    ref_app = jnp.concatenate([x, jnp.broadcast_to(pe[:S], (S, B, D))], axis=2)
    assert out_app.shape == (S, B, 2 * D)
    assert jnp.allclose(out_app, ref_app, atol=1e-6), "append mismatch"

    # 4) Training-mode dropout (add path), multi-block grid.
    p = 0.1
    out_tr = positional_encoding_forward(x2, pe2, dropout_p=p, append=False,
                                         training=True, seed=123,
                                         force_pallas=True, tile_s=8)
    out_tr = jax.block_until_ready(out_tr)
    scaled = (x2 + pe2[:S2]) / (1.0 - p)
    ok = (out_tr == 0.0) | jnp.isclose(out_tr, scaled, rtol=1e-4, atol=1e-5)
    assert bool(jnp.all(ok)), "dropout values are neither zero nor scaled input"
    keep_rate = float(jnp.mean((out_tr != 0.0).astype(jnp.float32)))
    assert 0.85 <= keep_rate <= 0.95, f"implausible keep rate {keep_rate}"

    # 5) Training-mode dropout on the fused append path.
    out_tra = positional_encoding_forward(x, pe, dropout_p=p, append=True,
                                          training=True, seed=7,
                                          force_pallas=True)
    out_tra = jax.block_until_ready(out_tra)
    scaled_app = ref_app / (1.0 - p)
    ok2 = (out_tra == 0.0) | jnp.isclose(out_tra, scaled_app, rtol=1e-4, atol=1e-5)
    assert bool(jnp.all(ok2)), "append-dropout values are neither zero nor scaled"
    keep2 = float(jnp.mean((out_tra != 0.0).astype(jnp.float32)))
    assert 0.75 <= keep2 <= 0.99, f"implausible append keep rate {keep2}"

    print("KERNEL_OK")
</pallas_src>

<mosaic_0001>
module attributes {stable_mosaic.version = 11 : i64} {
  func.func @_pe_add_kernel(%arg0: i32, %arg1: memref<8x2x32xf32, #tpu.memory_space<vmem>>, %arg2: memref<8x1x32xf32, #tpu.memory_space<vmem>>, %arg3: memref<8x2x32xf32, #tpu.memory_space<vmem>>) attributes {dimension_semantics = [#tpu.dimension_semantics<parallel>], iteration_bounds = array<i64: 1>, scalar_prefetch = 0 : i64, scratch_operands = 0 : i64, tpu.core_type = #tpu.core_type<tc>, window_params = [{transform_indices = @transform_0, window_bounds = array<i64: 8, 2, 32>}, {transform_indices = @transform_1, window_bounds = array<i64: 8, 1, 32>}, {transform_indices = @transform_2, window_bounds = array<i64: 8, 2, 32>}]} {
    %c0 = arith.constant 0 : index
    %c0_0 = arith.constant 0 : index
    %c0_1 = arith.constant 0 : index
    %0 = vector.load %arg1[%c0, %c0_0, %c0_1] : memref<8x2x32xf32, #tpu.memory_space<vmem>>, vector<8x2x32xf32>
    %c0_2 = arith.constant 0 : index
    %c0_3 = arith.constant 0 : index
    %c0_4 = arith.constant 0 : index
    %1 = vector.load %arg2[%c0_2, %c0_3, %c0_4] : memref<8x1x32xf32, #tpu.memory_space<vmem>>, vector<8x1x32xf32>
    %2 = vector.broadcast %1 : vector<8x1x32xf32> to vector<8x2x32xf32>
    %3 = arith.addf %0, %2 : vector<8x2x32xf32>
    %c0_5 = arith.constant 0 : index
    %c0_6 = arith.constant 0 : index
    %c0_7 = arith.constant 0 : index
    %4 = vector.load %arg3[%c0_5, %c0_6, %c0_7] : memref<8x2x32xf32, #tpu.memory_space<vmem>>, vector<8x2x32xf32>
    tpu.vector_store %arg3[%c0_5, %c0_6, %c0_7], %3 {strides = array<i32>} : memref<8x2x32xf32, #tpu.memory_space<vmem>>, vector<8x2x32xf32>,
    return
  }
  func.func @transform_0(%arg0: i32) -> (i32, i32, i32) {
    %c0_i32 = arith.constant 0 : i32
    %c0_i32_0 = arith.constant 0 : i32
    %c0_i32_1 = arith.constant 0 : i32
    return %arg0, %c0_i32, %c0_i32_0 : i32, i32, i32
  }
  func.func @transform_1(%arg0: i32) -> (i32, i32, i32) {
    %c0_i32 = arith.constant 0 : i32
    %c0_i32_0 = arith.constant 0 : i32
    %c0_i32_1 = arith.constant 0 : i32
    return %arg0, %c0_i32, %c0_i32_0 : i32, i32, i32
  }
  func.func @transform_2(%arg0: i32) -> (i32, i32, i32) {
    %c0_i32 = arith.constant 0 : i32
    %c0_i32_0 = arith.constant 0 : i32
    %c0_i32_1 = arith.constant 0 : i32
    return %arg0, %c0_i32, %c0_i32_0 : i32, i32, i32
  }
}

</mosaic_0001>

<bundles_post_ra>
// kernel: tpu_custom_call.1
= control target key start
LH: loop header
LB: loop body
LE: loop exit
PB: predicated region body
PF: predicated region fallthrough
CT: control target
= control target key end

     0   :  { %7 = vsyncpa [#allocation3], 0  ;;  %s266_s0 = inlined_call_operand.hbm [shape: f32[8,2,32], index: 0, kind: input, shape index: {}]   ;;  %s267_s1 = inlined_call_operand.hbm [shape: f32[8,1,32], index: 1, kind: input, shape index: {}]   ;;  %s268_s2 = inlined_call_operand.hbm [shape: f32[8,2,32], index: 2, kind: output, shape index: {}]  }
   0x1   :  { %8 = vsyncpa [#allocation6], 0 }
   0x2   :  { %9 = vsyncpa [#allocation4], 0  ;;  %s14_s11 = sshll.u32 %s266_s0, 4  ;;  %s214_s12 = smov [#allocation2]   ;;  %s15_s11 = int_to_ptr.hbm [resolvable:$true] %s14_s11 }
   0x3   :  { %s16_s13 = sshll.u32 %s214_s12, 4  ;;  %s27_s16 = sshll.u32 %s267_s1, 4  ;;  %s17_s13 = int_to_ptr.vmem [resolvable:$true] %s16_s13  ;;  %s28_s16 = int_to_ptr.hbm [resolvable:$true] %s27_s16 }
   0x4   :  { %s215_s17 = smov 32   ;;  %s216_s18 = smov 2  }
   0x5   :  { %22 = dma.hbm_to_vmem [thread:$0]  %s15_s11, 256, %s17_s13, [#allocation3], %s215_s17, %s215_s17, %s216_s18  }
   0x6   :  { %s217_s19 = smov [#allocation5]   ;;  %s218_s21 = smov 16  }
   0x7   :  { %s29_s20 = sshll.u32 %s217_s19, 4  ;;  %s219_s0 = smov 1   ;;  %s30_s20 = int_to_ptr.vmem [resolvable:$true] %s29_s20 }
   0x8   :  { %35 = dma.hbm_to_vmem [thread:$0]  %s28_s16, 128, %s30_s20, [#allocation6], %s218_s21, %s218_s21, %s219_s0  }
   0x9   :  { %208 = dma.done.wait [#allocation3], 256  }
   0xa   :  { %209 = vsyncadd [#allocation3], 4294967040 }
   0xb   :  { %210 = dma.done.wait [#allocation6], 128  }
   0xc   :  { %211 = vsyncadd [#allocation6], 4294967168  ;;  %vm92_vm0 = vcmask 254976   ;;  %s220_s22 = smov [#allocation7]   ;;  %s107_s25 = sshll.u32 %s268_s2, 4  ;;  %s108_s25 = int_to_ptr.hbm [resolvable:$true] %s107_s25 }
   0xd   :  { %s245_s1 = sshll.u32 %s220_s22, 4  ;;  %v44_v0 = vld [vmem:[#allocation2] sm:$0x3]  ;;  %v128_v1 = vld [vmem:[#allocation5] ss:$0 sm:$0xff]  ;;  %s106_s1 = int_to_ptr.vmem [resolvable:$true] %s245_s1 }
   0xe   :  { %v45_v2 = vld [vmem:[#allocation2 + $0x2] sm:$0x3]  ;;  %v129_v3 = vld [vmem:[#allocation5 + $0x1] ss:$0 sm:$0xff]  ;;  %v84_v4 = vadd.f32 %v128_v1, %v44_v0  ;;  %v46_v5 = vld [vmem:[#allocation2 + $0x4] sm:$0x3] }
   0xf   :  { %v130_v6 = vld [vmem:[#allocation5 + $0x2] ss:$0 sm:$0xff]  ;;  %v85_v7 = vadd.f32 %v129_v3, %v45_v2  ;;  %v47_v8 = vld [vmem:[#allocation2 + $0x6] sm:$0x3]  ;;  %v131_v9 = vld [vmem:[#allocation5 + $0x3] ss:$0 sm:$0xff] }
  0x10   :  { %93 = vst.msk [vmem:[#allocation7] sm:$0x3] %vm92_vm0, %v84_v4  ;;  %v86_v10 = vadd.f32 %v130_v6, %v46_v5  ;;  %v48_v11 = vld [vmem:[#allocation2 + $0x8] sm:$0x3]  ;;  %v87_v12 = vadd.f32 %v131_v9, %v47_v8  ;;  %v132_v13 = vld [vmem:[#allocation5 + $0x4] ss:$0 sm:$0xff] }
  0x11   :  { %94 = vst.msk [vmem:[#allocation7 + $0x2] sm:$0x3] %vm92_vm0, %v85_v7  ;;  %v49_v14 = vld [vmem:[#allocation2 + $0xa] sm:$0x3]  ;;  %v133_v15 = vld [vmem:[#allocation5 + $0x5] ss:$0 sm:$0xff]  ;;  %v88_v16 = vadd.f32 %v132_v13, %v48_v11 }
  0x12   :  { %95 = vst.msk [vmem:[#allocation7 + $0x4] sm:$0x3] %vm92_vm0, %v86_v10  ;;  %v50_v17 = vld [vmem:[#allocation2 + $0xc] sm:$0x3]  ;;  %v89_v18 = vadd.f32 %v133_v15, %v49_v14  ;;  %v134_v19 = vld [vmem:[#allocation5 + $0x6] ss:$0 sm:$0xff] }
  0x13   :  { %96 = vst.msk [vmem:[#allocation7 + $0x6] sm:$0x3] %vm92_vm0, %v87_v12  ;;  %v51_v20 = vld [vmem:[#allocation2 + $0xe] sm:$0x3]  ;;  %v135_v21 = vld [vmem:[#allocation5 + $0x7] ss:$0 sm:$0xff]  ;;  %v90_v22 = vadd.f32 %v134_v19, %v50_v17 }
  0x14   :  { %97 = vst.msk [vmem:[#allocation7 + $0x8] sm:$0x3] %vm92_vm0, %v88_v16  ;;  %v91_v23 = vadd.f32 %v135_v21, %v51_v20 }
  0x15   :  { %98 = vst.msk [vmem:[#allocation7 + $0xa] sm:$0x3] %vm92_vm0, %v89_v18 }
  0x16   :  { %99 = vst.msk [vmem:[#allocation7 + $0xc] sm:$0x3] %vm92_vm0, %v90_v22 }
  0x17   :  { %100 = vst.msk [vmem:[#allocation7 + $0xe] sm:$0x3] %vm92_vm0, %v91_v23 }
  0x18   :  { %113 = dma.vmem_to_hbm [thread:$0]  %s106_s1, 256, %s108_s25, [#allocation4], %s215_s17, %s215_s17, %s216_s18  }
  0x19   :  { %212 = dma.done.wait [#allocation4], 256  }
  0x1a   :  { %213 = vsyncadd [#allocation4], 4294967040 }
  0x1b   :  { %118 = vsyncpa [#allocation3], 1 }
  0x1c   :  { %119 = vsyncpa [#allocation6], 1 }
  0x1d   :  { %120 = vsyncpa [#allocation4], 1 }

</bundles_post_ra>
